<compile_context>
chip_gen: v6e
topology: v6e:2x2x1
jax: 0.10.0
libtpu: 0.0.40
codegen_flags: <defaults>
</compile_context>

<pallas_src>
import jax
import jax.numpy as jnp
from jax import lax
from jax.experimental import pallas as pl
from jax.experimental.pallas import tpu as pltpu


def _lccrf_kernel(maxlen_ref,                       # SMEM (num_tiles,) i32
                  em_ref, tags_ref, mask_ref,       # (TC,L,BT) (TC,BT) (TC,BT)
                  bos_ref, eos_ref, cmax_ref,       # (L,1) each
                  exp_trans_ref, trans_ref,         # (L,L) each
                  out_ref,                          # (1,BT)
                  alphas_sc, score_sc, ohprev_sc, ohlast_sc):
    TC, L, BT = em_ref.shape
    i = pl.program_id(0)          # batch tile
    tchunk = pl.program_id(1)     # time chunk (reduction axis, "arbitrary")
    n_chunks = pl.num_programs(1)

    bos_vec = bos_ref[...]                         # (L,1)  trans[BOS, :]
    eos_vec = eos_ref[...]                         # (L,1)  trans[:, EOS]
    cmax_col = cmax_ref[...]                       # (L,1)  per-column max of trans
    trans3 = trans_ref[...][:, :, None]            # (L,L,1) implicit lane broadcast
    exp_trans3 = exp_trans_ref[...][:, :, None]    # (L,L,1) exp(trans - colmax)

    lab = lax.broadcasted_iota(jnp.int32, (L, BT), 0)

    # ---------------- init (timestep 0) at the first T-chunk ----------------
    @pl.when(tchunk == 0)
    def _():
        em0 = em_ref[0].astype(jnp.float32)                        # (L,BT)
        oh0 = (lab == tags_ref[pl.ds(0, 1), :]).astype(jnp.float32)
        alphas_sc[...] = bos_vec + em0
        score_sc[...] = jnp.sum(oh0 * (em0 + bos_vec), axis=0, keepdims=True)
        ohprev_sc[...] = oh0
        ohlast_sc[...] = oh0

    # Local loop bounds: chunk 0 starts at step 1 (step 0 handled above);
    # the dynamic upper bound stops at the tile's longest valid sequence.
    t0 = tchunk * TC
    lo = jnp.where(tchunk == 0, 1, 0)
    hi = jnp.clip(maxlen_ref[i] - t0, 0, TC)

    def step(s, carry):
        alphas, score, oh_prev, oh_last = carry
        em_t = em_ref[s].astype(jnp.float32)          # (L,BT) dynamic leading load
        tg_t = tags_ref[pl.ds(s, 1), :]               # (1,BT) i32
        v_t = mask_ref[pl.ds(s, 1), :]                # (1,BT)
        oh_t = (lab == tg_t).astype(jnp.float32)      # (L,BT)

        # ---- gold-path score, fused into the recursion (VPU filler) ----
        # r_prev[c,b] = trans[tags[t-1,b], c]
        r_prev = jnp.sum(trans3 * oh_prev[:, None, :], axis=0)          # (L,BT)
        score = score + v_t * jnp.sum(oh_t * (em_t + r_prev),
                                      axis=0, keepdims=True)            # (1,BT)
        oh_prev = oh_t
        oh_last = jnp.where(v_t > 0.5, oh_t, oh_last)

        # ---- forward recursion, factored logsumexp (L*BT exps, not L^2*BT) ----
        ma = jnp.max(alphas, axis=0, keepdims=True)                     # (1,BT)
        ea = jnp.exp(alphas - ma)                                       # (L,BT)
        s_cb = jnp.sum(ea[:, None, :] * exp_trans3, axis=0)             # (L,BT)
        new_alphas = ma + cmax_col + jnp.log(s_cb) + em_t               # (L,BT)
        alphas = jnp.where(v_t > 0.5, new_alphas, alphas)
        return alphas, score, oh_prev, oh_last

    carry0 = (alphas_sc[...], score_sc[...], ohprev_sc[...], ohlast_sc[...])
    # TODO(synk): unroll=2/4 would shave scf overhead but needs static bounds;
    # kept dynamic (scalar-prefetched maxlen) to skip padded timesteps.
    alphas, score, oh_prev, oh_last = lax.fori_loop(lo, hi, step, carry0)
    alphas_sc[...] = alphas
    score_sc[...] = score
    ohprev_sc[...] = oh_prev
    ohlast_sc[...] = oh_last

    # ---------------- finalize: EOS terms + log-partition ----------------
    @pl.when(tchunk == n_chunks - 1)
    def _():
        a = alphas_sc[...]
        eos_gold = jnp.sum(ohlast_sc[...] * eos_vec, axis=0, keepdims=True)
        end = a + eos_vec
        m_end = jnp.max(end, axis=0, keepdims=True)
        log_z = m_end + jnp.log(jnp.sum(jnp.exp(end - m_end),
                                        axis=0, keepdims=True))
        out_ref[...] = score_sc[...] + eos_gold - log_z


def _ceil_to(x, m):
    return (x + m - 1) // m * m


def lccrf_nll(emissions, tags, transitions, mask=None, *,
              bos_tag_id, eos_tag_id, batch_first=True,
              batch_tile=128, t_chunk=128,
              emission_store_dtype=jnp.float32):
    """Negative log-likelihood of a linear-chain CRF (matches LCCRF.forward)."""
    if not batch_first:
        emissions = jnp.swapaxes(emissions, 0, 1)
        tags = jnp.swapaxes(tags, 0, 1)
        if mask is not None:
            mask = jnp.swapaxes(mask, 0, 1)

    B, T, L = emissions.shape
    if mask is None:
        mask = jnp.ones((B, T), jnp.float32)
    mask = mask.astype(jnp.float32)

    # ---- lane-dense layout: batch on the minor axis ----
    B_pad = _ceil_to(B, batch_tile)
    num_tiles = B_pad // batch_tile
    pad_b = B_pad - B

    # ---- time chunking: bound the VMEM block along T ----
    t_chunk = max(8, min(_ceil_to(t_chunk, 8), _ceil_to(T, 8)))
    T_pad = _ceil_to(_ceil_to(T, 8), t_chunk)
    num_chunks = T_pad // t_chunk
    pad_t = T_pad - T

    # emission_store_dtype=jnp.bfloat16 halves HBM traffic (useful on v5e);
    # the kernel always accumulates in f32.
    em_t = jnp.pad(
        jnp.transpose(emissions.astype(emission_store_dtype), (1, 2, 0)),
        ((0, pad_t), (0, 0), (0, pad_b)))                      # (T_pad, L, B_pad)
    tags_t = jnp.pad(jnp.transpose(tags.astype(jnp.int32), (1, 0)),
                     ((0, pad_t), (0, pad_b)))                 # (T_pad, B_pad)
    mask_t = jnp.pad(jnp.transpose(mask, (1, 0)),
                     ((0, pad_t), (0, pad_b)))                 # (T_pad, B_pad)

    trans = transitions.astype(jnp.float32)
    bos_vec = trans[bos_tag_id, :].reshape(L, 1)               # trans[BOS, :]
    eos_vec = trans[:, eos_tag_id].reshape(L, 1)               # trans[:, EOS]
    cmax_row = jnp.max(trans, axis=0, keepdims=True)           # (1, L)
    exp_trans = jnp.exp(trans - cmax_row)                      # (L, L), in (0, 1]
    cmax_col = cmax_row.reshape(L, 1)

    # Per-batch-tile max sequence length -> SMEM (dynamic fori bound).
    seq_len = jnp.sum(mask, axis=1).astype(jnp.int32)
    seq_len = jnp.pad(seq_len, (0, pad_b))
    maxlen = jnp.max(seq_len.reshape(num_tiles, batch_tile), axis=1)
    maxlen = jnp.minimum(maxlen, T_pad).astype(jnp.int32)

    # VMEM budget from the actual block sizes, with headroom (safe on v7x).
    em_bytes = jnp.dtype(emission_store_dtype).itemsize
    block_bytes = (t_chunk * L * batch_tile * em_bytes
                   + 2 * t_chunk * batch_tile * 4
                   + batch_tile * 4)
    vmem_limit = int(min(56 * 2**20, max(16 * 2**20, 4 * block_bytes)))

    ll = pl.pallas_call(
        _lccrf_kernel,
        out_shape=jax.ShapeDtypeStruct((1, B_pad), jnp.float32),
        grid_spec=pltpu.PrefetchScalarGridSpec(
            num_scalar_prefetch=1,
            grid=(num_tiles, num_chunks),
            in_specs=[
                pl.BlockSpec((t_chunk, L, batch_tile), lambda i, t, ml: (t, 0, i)),
                pl.BlockSpec((t_chunk, batch_tile), lambda i, t, ml: (t, i)),
                pl.BlockSpec((t_chunk, batch_tile), lambda i, t, ml: (t, i)),
                pl.BlockSpec((L, 1), lambda i, t, ml: (0, 0)),
                pl.BlockSpec((L, 1), lambda i, t, ml: (0, 0)),
                pl.BlockSpec((L, 1), lambda i, t, ml: (0, 0)),
                pl.BlockSpec((L, L), lambda i, t, ml: (0, 0)),
                pl.BlockSpec((L, L), lambda i, t, ml: (0, 0)),
            ],
            out_specs=pl.BlockSpec((1, batch_tile), lambda i, t, ml: (0, i)),
            scratch_shapes=[
                pltpu.VMEM((L, batch_tile), jnp.float32),   # alphas
                pltpu.VMEM((1, batch_tile), jnp.float32),   # gold-path score
                pltpu.VMEM((L, batch_tile), jnp.float32),   # one-hot(prev tag)
                pltpu.VMEM((L, batch_tile), jnp.float32),   # one-hot(last valid)
            ]),
        compiler_params=pltpu.CompilerParams(
            dimension_semantics=("parallel", "arbitrary"),
            vmem_limit_bytes=vmem_limit),
    )(maxlen, em_t, tags_t, mask_t, bos_vec, eos_vec, cmax_col, exp_trans, trans)

    return -jnp.sum(ll[0, :B])


def init_transitions(key, nb_labels, bos_tag_id, eos_tag_id):
    t = jax.random.uniform(key, (nb_labels, nb_labels), jnp.float32, -0.1, 0.1)
    t = t.at[:, bos_tag_id].set(-10000.0)   # never transition *into* BOS
    t = t.at[eos_tag_id, :].set(-10000.0)   # never transition *out of* EOS
    return t


def lccrf_nll_ref(emissions, tags, transitions, mask, bos, eos):
    """Pure-JAX mirror of the PyTorch module (gather-based), for checking."""
    B, T, L = emissions.shape
    first_tags = tags[:, 0]
    last_idx = jnp.sum(mask, axis=1).astype(jnp.int32) - 1
    last_tags = jnp.take_along_axis(tags, last_idx[:, None], axis=1)[:, 0]

    scores = (transitions[bos, first_tags]
              + jnp.take_along_axis(emissions[:, 0], first_tags[:, None],
                                    axis=1)[:, 0])
    for i in range(1, T):
        e = jnp.take_along_axis(emissions[:, i], tags[:, i][:, None], axis=1)[:, 0]
        t = transitions[tags[:, i - 1], tags[:, i]]
        scores = scores + (e + t) * mask[:, i]
    scores = scores + transitions[last_tags, eos]

    alphas = transitions[bos][None, :] + emissions[:, 0]
    for i in range(1, T):
        new_a = (jax.nn.logsumexp(alphas[:, :, None] + transitions[None], axis=1)
                 + emissions[:, i])
        v = mask[:, i][:, None]
        alphas = v * new_a + (1.0 - v) * alphas
    partition = jax.nn.logsumexp(alphas + transitions[:, eos][None, :], axis=1)
    return -jnp.sum(scores - partition)


if __name__ == "__main__":
    NB_LABELS = 8
    BOS_TAG_ID = 6
    EOS_TAG_ID = 7

    key = jax.random.PRNGKey(0)
    k_trans, k_em, k_tags, k_em2, k_tags2 = jax.random.split(key, 5)

    transitions = init_transitions(k_trans, NB_LABELS, BOS_TAG_ID, EOS_TAG_ID)

    # --- case 1: tiny batch, single time chunk ---
    B, T = 2, 8
    emissions = jax.random.normal(k_em, (B, T, NB_LABELS), jnp.float32)
    tags = jax.random.randint(k_tags, (B, T), 0, NB_LABELS - 2, jnp.int32)
    mask = jnp.ones((B, T), jnp.float32).at[1, T - 2:].set(0.0)

    nll = lccrf_nll(emissions, tags, transitions, mask,
                    bos_tag_id=BOS_TAG_ID, eos_tag_id=EOS_TAG_ID,
                    batch_first=True)
    nll = jax.block_until_ready(nll)
    ref = lccrf_nll_ref(emissions, tags, transitions, mask,
                        BOS_TAG_ID, EOS_TAG_ID)
    assert jnp.allclose(nll, ref, rtol=1e-4, atol=1e-3), (nll, ref)

    # --- case 2: ragged batch, multiple time chunks (exercises T-chunking
    #             + scratch carries + scalar-prefetched maxlen) ---
    B2, T2 = 2, 24
    em2 = jax.random.normal(k_em2, (B2, T2, NB_LABELS), jnp.float32)
    tg2 = jax.random.randint(k_tags2, (B2, T2), 0, NB_LABELS - 2, jnp.int32)
    mk2 = (jnp.ones((B2, T2), jnp.float32)
           .at[0, 20:].set(0.0)
           .at[1, 9:].set(0.0))

    nll2 = lccrf_nll(em2, tg2, transitions, mk2,
                     bos_tag_id=BOS_TAG_ID, eos_tag_id=EOS_TAG_ID,
                     batch_first=True, t_chunk=8)
    nll2 = jax.block_until_ready(nll2)
    ref2 = lccrf_nll_ref(em2, tg2, transitions, mk2, BOS_TAG_ID, EOS_TAG_ID)
    assert jnp.allclose(nll2, ref2, rtol=1e-4, atol=1e-3), (nll2, ref2)

    print("KERNEL_OK")
</pallas_src>

<mosaic_0001>
module attributes {stable_mosaic.version = 11 : i64} {
  func.func @_lccrf_kernel(%arg0: i32, %arg1: i32, %arg2: memref<1xi32, #tpu.memory_space<smem>>, %arg3: memref<8x8x128xf32, #tpu.memory_space<vmem>>, %arg4: memref<8x128xi32, #tpu.memory_space<vmem>>, %arg5: memref<8x128xf32, #tpu.memory_space<vmem>>, %arg6: memref<8x1xf32, #tpu.memory_space<vmem>>, %arg7: memref<8x1xf32, #tpu.memory_space<vmem>>, %arg8: memref<8x1xf32, #tpu.memory_space<vmem>>, %arg9: memref<8x8xf32, #tpu.memory_space<vmem>>, %arg10: memref<8x8xf32, #tpu.memory_space<vmem>>, %arg11: memref<1x128xf32, #tpu.memory_space<vmem>>, %arg12: memref<8x128xf32, #tpu.memory_space<vmem>>, %arg13: memref<1x128xf32, #tpu.memory_space<vmem>>, %arg14: memref<8x128xf32, #tpu.memory_space<vmem>>, %arg15: memref<8x128xf32, #tpu.memory_space<vmem>>) attributes {dimension_semantics = [#tpu.dimension_semantics<parallel>, #tpu.dimension_semantics<arbitrary>], iteration_bounds = array<i64: 1, 1>, scalar_prefetch = 1 : i64, scratch_operands = 4 : i64, tpu.core_type = #tpu.core_type<tc>, window_params = [{transform_indices = @transform_0, window_bounds = array<i64: 8, 8, 128>}, {transform_indices = @transform_1, window_bounds = array<i64: 8, 128>}, {transform_indices = @transform_2, window_bounds = array<i64: 8, 128>}, {pipeline_mode = #tpu.pipeline_mode<synchronous>, transform_indices = @transform_3, window_bounds = array<i64: 8, 1>}, {pipeline_mode = #tpu.pipeline_mode<synchronous>, transform_indices = @transform_4, window_bounds = array<i64: 8, 1>}, {pipeline_mode = #tpu.pipeline_mode<synchronous>, transform_indices = @transform_5, window_bounds = array<i64: 8, 1>}, {pipeline_mode = #tpu.pipeline_mode<synchronous>, transform_indices = @transform_6, window_bounds = array<i64: 8, 8>}, {pipeline_mode = #tpu.pipeline_mode<synchronous>, transform_indices = @transform_7, window_bounds = array<i64: 8, 8>}, {transform_indices = @transform_8, window_bounds = array<i64: 1, 128>}]} {
    %c0 = arith.constant 0 : index
    %c0_0 = arith.constant 0 : index
    %0 = vector.load %arg6[%c0, %c0_0] : memref<8x1xf32, #tpu.memory_space<vmem>>, vector<8x1xf32>
    %c0_1 = arith.constant 0 : index
    %c0_2 = arith.constant 0 : index
    %1 = vector.load %arg7[%c0_1, %c0_2] : memref<8x1xf32, #tpu.memory_space<vmem>>, vector<8x1xf32>
    %c0_3 = arith.constant 0 : index
    %c0_4 = arith.constant 0 : index
    %2 = vector.load %arg8[%c0_3, %c0_4] : memref<8x1xf32, #tpu.memory_space<vmem>>, vector<8x1xf32>
    %c0_5 = arith.constant 0 : index
    %c0_6 = arith.constant 0 : index
    %3 = vector.load %arg10[%c0_5, %c0_6] : memref<8x8xf32, #tpu.memory_space<vmem>>, vector<8x8xf32>
    %4 = vector.shape_cast %3 : vector<8x8xf32> to vector<8x8x1xf32>
    %c0_7 = arith.constant 0 : index
    %c0_8 = arith.constant 0 : index
    %5 = vector.load %arg9[%c0_7, %c0_8] : memref<8x8xf32, #tpu.memory_space<vmem>>, vector<8x8xf32>
    %6 = vector.shape_cast %5 : vector<8x8xf32> to vector<8x8x1xf32>
    %7 = tpu.iota {dimensions = array<i32: 0>} : vector<8x128xi32>
    %c0_i32 = arith.constant 0 : i32
    %8 = arith.cmpi eq, %arg1, %c0_i32 : i32
    %9 = arith.extui %8 : i1 to i32
    %c0_i32_9 = arith.constant 0 : i32
    %10 = arith.cmpi ne, %9, %c0_i32_9 : i32
    scf.if %10 {
      %c0_33 = arith.constant 0 : index
      %c0_34 = arith.constant 0 : index
      %c0_35 = arith.constant 0 : index
      %33 = vector.load %arg3[%c0_33, %c0_34, %c0_35] : memref<8x8x128xf32, #tpu.memory_space<vmem>>, vector<1x8x128xf32>
      %34 = vector.shape_cast %33 : vector<1x8x128xf32> to vector<8x128xf32>
      %c0_36 = arith.constant 0 : index
      %c0_37 = arith.constant 0 : index
      %35 = vector.load %arg4[%c0_36, %c0_37] : memref<8x128xi32, #tpu.memory_space<vmem>>, vector<1x128xi32>
      %36 = vector.broadcast %35 : vector<1x128xi32> to vector<8x128xi32>
      %37 = arith.cmpi eq, %7, %36 : vector<8x128xi32>
      %38 = arith.extui %37 : vector<8x128xi1> to vector<8x128xi32>
      %39 = arith.sitofp %38 : vector<8x128xi32> to vector<8x128xf32>
      %40 = vector.broadcast %0 : vector<8x1xf32> to vector<8x128xf32>
      %41 = arith.addf %40, %34 : vector<8x128xf32>
      %c0_38 = arith.constant 0 : index
      %c0_39 = arith.constant 0 : index
      %42 = vector.load %arg12[%c0_38, %c0_39] : memref<8x128xf32, #tpu.memory_space<vmem>>, vector<8x128xf32>
      tpu.vector_store %arg12[%c0_38, %c0_39], %41 {strides = array<i32>} : memref<8x128xf32, #tpu.memory_space<vmem>>, vector<8x128xf32>,
      %43 = vector.broadcast %0 : vector<8x1xf32> to vector<8x128xf32>
      %44 = arith.addf %34, %43 : vector<8x128xf32>
      %45 = arith.mulf %39, %44 : vector<8x128xf32>
      %cst = arith.constant dense<0.000000e+00> : vector<128xf32>
      %46 = vector.multi_reduction <add>, %45, %cst [0] : vector<8x128xf32> to vector<128xf32>
      %47 = vector.shape_cast %46 : vector<128xf32> to vector<1x128xf32>
      %c0_40 = arith.constant 0 : index
      %c0_41 = arith.constant 0 : index
      %48 = vector.load %arg13[%c0_40, %c0_41] : memref<1x128xf32, #tpu.memory_space<vmem>>, vector<1x128xf32>
      tpu.vector_store %arg13[%c0_40, %c0_41], %47 {strides = array<i32>} : memref<1x128xf32, #tpu.memory_space<vmem>>, vector<1x128xf32>,
      %c0_42 = arith.constant 0 : index
      %c0_43 = arith.constant 0 : index
      %49 = vector.load %arg14[%c0_42, %c0_43] : memref<8x128xf32, #tpu.memory_space<vmem>>, vector<8x128xf32>
      tpu.vector_store %arg14[%c0_42, %c0_43], %39 {strides = array<i32>} : memref<8x128xf32, #tpu.memory_space<vmem>>, vector<8x128xf32>,
      %c0_44 = arith.constant 0 : index
      %c0_45 = arith.constant 0 : index
      %50 = vector.load %arg15[%c0_44, %c0_45] : memref<8x128xf32, #tpu.memory_space<vmem>>, vector<8x128xf32>
      tpu.vector_store %arg15[%c0_44, %c0_45], %39 {strides = array<i32>} : memref<8x128xf32, #tpu.memory_space<vmem>>, vector<8x128xf32>,
    } else {
    }
    %c8_i32 = arith.constant 8 : i32
    %11 = arith.muli %arg1, %c8_i32 : i32
    %c0_i32_10 = arith.constant 0 : i32
    %12 = arith.cmpi eq, %arg1, %c0_i32_10 : i32
    %c1_i32 = arith.constant 1 : i32
    %c0_i32_11 = arith.constant 0 : i32
    %13 = arith.select %12, %c1_i32, %c0_i32_11 : i32
    %14 = arith.index_cast %arg0 : i32 to index
    %15 = memref.load %arg2[%14] : memref<1xi32, #tpu.memory_space<smem>>
    %16 = arith.subi %15, %11 : i32
    %c0_i32_12 = arith.constant 0 : i32
    %c8_i32_13 = arith.constant 8 : i32
    %17 = arith.maxsi %c0_i32_12, %16 : i32
    %18 = arith.minsi %c8_i32_13, %17 : i32
    %c0_14 = arith.constant 0 : index
    %c0_15 = arith.constant 0 : index
    %19 = vector.load %arg12[%c0_14, %c0_15] : memref<8x128xf32, #tpu.memory_space<vmem>>, vector<8x128xf32>
    %c0_16 = arith.constant 0 : index
    %c0_17 = arith.constant 0 : index
    %20 = vector.load %arg13[%c0_16, %c0_17] : memref<1x128xf32, #tpu.memory_space<vmem>>, vector<1x128xf32>
    %c0_18 = arith.constant 0 : index
    %c0_19 = arith.constant 0 : index
    %21 = vector.load %arg14[%c0_18, %c0_19] : memref<8x128xf32, #tpu.memory_space<vmem>>, vector<8x128xf32>
    %c0_20 = arith.constant 0 : index
    %c0_21 = arith.constant 0 : index
    %22 = vector.load %arg15[%c0_20, %c0_21] : memref<8x128xf32, #tpu.memory_space<vmem>>, vector<8x128xf32>
    %23 = arith.subi %18, %13 : i32
    %24 = arith.addi %13, %23 : i32
    %c1_i32_22 = arith.constant 1 : i32
    %25:4 = scf.for %arg16 = %13 to %24 step %c1_i32_22 iter_args(%arg17 = %19, %arg18 = %20, %arg19 = %21, %arg20 = %22) -> (vector<8x128xf32>, vector<1x128xf32>, vector<8x128xf32>, vector<8x128xf32>)  : i32 {
      %33 = arith.index_cast %arg16 : i32 to index
      %c0_33 = arith.constant 0 : index
      %c0_34 = arith.constant 0 : index
      %34 = vector.load %arg3[%33, %c0_33, %c0_34] : memref<8x8x128xf32, #tpu.memory_space<vmem>>, vector<1x8x128xf32>
      %35 = vector.shape_cast %34 : vector<1x8x128xf32> to vector<8x128xf32>
      %36 = arith.index_cast %arg16 : i32 to index
      %c0_35 = arith.constant 0 : index
      %37 = vector.load %arg4[%36, %c0_35] : memref<8x128xi32, #tpu.memory_space<vmem>>, vector<1x128xi32>
      %38 = arith.index_cast %arg16 : i32 to index
      %c0_36 = arith.constant 0 : index
      %39 = vector.load %arg5[%38, %c0_36] : memref<8x128xf32, #tpu.memory_space<vmem>>, vector<1x128xf32>
      %40 = vector.broadcast %37 : vector<1x128xi32> to vector<8x128xi32>
      %41 = arith.cmpi eq, %7, %40 : vector<8x128xi32>
      %42 = arith.extui %41 : vector<8x128xi1> to vector<8x128xi32>
      %43 = arith.sitofp %42 : vector<8x128xi32> to vector<8x128xf32>
      %44 = vector.shape_cast %arg19 : vector<8x128xf32> to vector<8x1x128xf32>
      %45 = vector.broadcast %4 : vector<8x8x1xf32> to vector<8x8x128xf32>
      %46 = vector.broadcast %44 : vector<8x1x128xf32> to vector<8x8x128xf32>
      %47 = arith.mulf %45, %46 : vector<8x8x128xf32>
      %cst = arith.constant dense<0.000000e+00> : vector<8x128xf32>
      %48 = vector.multi_reduction <add>, %47, %cst [0] : vector<8x8x128xf32> to vector<8x128xf32>
      %49 = arith.addf %35, %48 : vector<8x128xf32>
      %50 = arith.mulf %43, %49 : vector<8x128xf32>
      %cst_37 = arith.constant dense<0.000000e+00> : vector<128xf32>
      %51 = vector.multi_reduction <add>, %50, %cst_37 [0] : vector<8x128xf32> to vector<128xf32>
      %52 = vector.shape_cast %51 : vector<128xf32> to vector<1x128xf32>
      %53 = arith.mulf %39, %52 : vector<1x128xf32>
      %54 = arith.addf %arg18, %53 : vector<1x128xf32>
      %cst_38 = arith.constant 5.000000e-01 : f32
      %55 = vector.broadcast %cst_38 : f32 to vector<1x128xf32>
      %56 = arith.cmpf ogt, %39, %55 : vector<1x128xf32>
      %57 = vector.shape_cast %56 : vector<1x128xi1> to vector<1x128xi1>
      %58 = vector.broadcast %57 : vector<1x128xi1> to vector<8x128xi1>
      %59 = arith.select %58, %43, %arg20 : vector<8x128xi1>, vector<8x128xf32>
      %cst_39 = arith.constant dense<0xFF800000> : vector<128xf32>
      %60 = vector.multi_reduction <maximumf>, %arg17, %cst_39 [0] : vector<8x128xf32> to vector<128xf32>
      %61 = vector.shape_cast %60 : vector<128xf32> to vector<1x128xf32>
      %62 = vector.broadcast %61 : vector<1x128xf32> to vector<8x128xf32>
      %63 = arith.subf %arg17, %62 : vector<8x128xf32>
      %64 = math.exp %63 : vector<8x128xf32>
      %65 = vector.shape_cast %64 : vector<8x128xf32> to vector<8x1x128xf32>
      %66 = vector.broadcast %65 : vector<8x1x128xf32> to vector<8x8x128xf32>
      %67 = vector.broadcast %6 : vector<8x8x1xf32> to vector<8x8x128xf32>
      %68 = arith.mulf %66, %67 : vector<8x8x128xf32>
      %cst_40 = arith.constant dense<0.000000e+00> : vector<8x128xf32>
      %69 = vector.multi_reduction <add>, %68, %cst_40 [0] : vector<8x8x128xf32> to vector<8x128xf32>
      %70 = vector.broadcast %61 : vector<1x128xf32> to vector<8x128xf32>
      %71 = vector.broadcast %2 : vector<8x1xf32> to vector<8x128xf32>
      %72 = arith.addf %70, %71 : vector<8x128xf32>
      %73 = math.log %69 : vector<8x128xf32>
      %74 = arith.addf %72, %73 : vector<8x128xf32>
      %75 = arith.addf %74, %35 : vector<8x128xf32>
      %cst_41 = arith.constant 5.000000e-01 : f32
      %76 = vector.broadcast %cst_41 : f32 to vector<1x128xf32>
      %77 = arith.cmpf ogt, %39, %76 : vector<1x128xf32>
      %78 = vector.shape_cast %77 : vector<1x128xi1> to vector<1x128xi1>
      %79 = vector.broadcast %78 : vector<1x128xi1> to vector<8x128xi1>
      %80 = arith.select %79, %75, %arg17 : vector<8x128xi1>, vector<8x128xf32>
      scf.yield %80, %54, %43, %59 : vector<8x128xf32>, vector<1x128xf32>, vector<8x128xf32>, vector<8x128xf32>
    }
    %c0_23 = arith.constant 0 : index
    %c0_24 = arith.constant 0 : index
    %26 = vector.load %arg12[%c0_23, %c0_24] : memref<8x128xf32, #tpu.memory_space<vmem>>, vector<8x128xf32>
    tpu.vector_store %arg12[%c0_23, %c0_24], %25#0 {strides = array<i32>} : memref<8x128xf32, #tpu.memory_space<vmem>>, vector<8x128xf32>,
    %c0_25 = arith.constant 0 : index
    %c0_26 = arith.constant 0 : index
    %27 = vector.load %arg13[%c0_25, %c0_26] : memref<1x128xf32, #tpu.memory_space<vmem>>, vector<1x128xf32>
    tpu.vector_store %arg13[%c0_25, %c0_26], %25#1 {strides = array<i32>} : memref<1x128xf32, #tpu.memory_space<vmem>>, vector<1x128xf32>,
    %c0_27 = arith.constant 0 : index
    %c0_28 = arith.constant 0 : index
    %28 = vector.load %arg14[%c0_27, %c0_28] : memref<8x128xf32, #tpu.memory_space<vmem>>, vector<8x128xf32>
    tpu.vector_store %arg14[%c0_27, %c0_28], %25#2 {strides = array<i32>} : memref<8x128xf32, #tpu.memory_space<vmem>>, vector<8x128xf32>,
    %c0_29 = arith.constant 0 : index
    %c0_30 = arith.constant 0 : index
    %29 = vector.load %arg15[%c0_29, %c0_30] : memref<8x128xf32, #tpu.memory_space<vmem>>, vector<8x128xf32>
    tpu.vector_store %arg15[%c0_29, %c0_30], %25#3 {strides = array<i32>} : memref<8x128xf32, #tpu.memory_space<vmem>>, vector<8x128xf32>,
    %c0_i32_31 = arith.constant 0 : i32
    %30 = arith.cmpi eq, %arg1, %c0_i32_31 : i32
    %31 = arith.extui %30 : i1 to i32
    %c0_i32_32 = arith.constant 0 : i32
    %32 = arith.cmpi ne, %31, %c0_i32_32 : i32
    scf.if %32 {
      %c0_33 = arith.constant 0 : index
      %c0_34 = arith.constant 0 : index
      %33 = vector.load %arg12[%c0_33, %c0_34] : memref<8x128xf32, #tpu.memory_space<vmem>>, vector<8x128xf32>
      %c0_35 = arith.constant 0 : index
      %c0_36 = arith.constant 0 : index
      %34 = vector.load %arg15[%c0_35, %c0_36] : memref<8x128xf32, #tpu.memory_space<vmem>>, vector<8x128xf32>
      %35 = vector.broadcast %1 : vector<8x1xf32> to vector<8x128xf32>
      %36 = arith.mulf %34, %35 : vector<8x128xf32>
      %cst = arith.constant dense<0.000000e+00> : vector<128xf32>
      %37 = vector.multi_reduction <add>, %36, %cst [0] : vector<8x128xf32> to vector<128xf32>
      %38 = vector.shape_cast %37 : vector<128xf32> to vector<1x128xf32>
      %39 = vector.broadcast %1 : vector<8x1xf32> to vector<8x128xf32>
      %40 = arith.addf %33, %39 : vector<8x128xf32>
      %cst_37 = arith.constant dense<0xFF800000> : vector<128xf32>
      %41 = vector.multi_reduction <maximumf>, %40, %cst_37 [0] : vector<8x128xf32> to vector<128xf32>
      %42 = vector.shape_cast %41 : vector<128xf32> to vector<1x128xf32>
      %43 = vector.broadcast %42 : vector<1x128xf32> to vector<8x128xf32>
      %44 = arith.subf %40, %43 : vector<8x128xf32>
      %45 = math.exp %44 : vector<8x128xf32>
      %cst_38 = arith.constant dense<0.000000e+00> : vector<128xf32>
      %46 = vector.multi_reduction <add>, %45, %cst_38 [0] : vector<8x128xf32> to vector<128xf32>
      %47 = vector.shape_cast %46 : vector<128xf32> to vector<1x128xf32>
      %48 = math.log %47 : vector<1x128xf32>
      %49 = arith.addf %42, %48 : vector<1x128xf32>
      %c0_39 = arith.constant 0 : index
      %c0_40 = arith.constant 0 : index
      %50 = vector.load %arg13[%c0_39, %c0_40] : memref<1x128xf32, #tpu.memory_space<vmem>>, vector<1x128xf32>
      %51 = arith.addf %50, %38 : vector<1x128xf32>
      %52 = arith.subf %51, %49 : vector<1x128xf32>
      %c0_41 = arith.constant 0 : index
      %c0_42 = arith.constant 0 : index
      %53 = vector.load %arg11[%c0_41, %c0_42] : memref<1x128xf32, #tpu.memory_space<vmem>>, vector<1x128xf32>
      tpu.vector_store %arg11[%c0_41, %c0_42], %52 {strides = array<i32>} : memref<1x128xf32, #tpu.memory_space<vmem>>, vector<1x128xf32>,
    } else {
    }
    return
  }
  func.func @transform_0(%arg0: i32, %arg1: i32, %arg2: memref<1xi32, #tpu.memory_space<smem>>) -> (i32, i32, i32) {
    %c0_i32 = arith.constant 0 : i32
    %c0_i32_0 = arith.constant 0 : i32
    return %arg1, %c0_i32, %arg0 : i32, i32, i32
  }
  func.func @transform_1(%arg0: i32, %arg1: i32, %arg2: memref<1xi32, #tpu.memory_space<smem>>) -> (i32, i32) {
    %c0_i32 = arith.constant 0 : i32
    return %arg1, %arg0 : i32, i32
  }
  func.func @transform_2(%arg0: i32, %arg1: i32, %arg2: memref<1xi32, #tpu.memory_space<smem>>) -> (i32, i32) {
    %c0_i32 = arith.constant 0 : i32
    return %arg1, %arg0 : i32, i32
  }
  func.func @transform_3(%arg0: i32, %arg1: i32, %arg2: memref<1xi32, #tpu.memory_space<smem>>) -> (i32, i32) {
    %c0_i32 = arith.constant 0 : i32
    %c0_i32_0 = arith.constant 0 : i32
    %c0_i32_1 = arith.constant 0 : i32
    return %c0_i32, %c0_i32_0 : i32, i32
  }
  func.func @transform_4(%arg0: i32, %arg1: i32, %arg2: memref<1xi32, #tpu.memory_space<smem>>) -> (i32, i32) {
    %c0_i32 = arith.constant 0 : i32
    %c0_i32_0 = arith.constant 0 : i32
    %c0_i32_1 = arith.constant 0 : i32
    return %c0_i32, %c0_i32_0 : i32, i32
  }
  func.func @transform_5(%arg0: i32, %arg1: i32, %arg2: memref<1xi32, #tpu.memory_space<smem>>) -> (i32, i32) {
    %c0_i32 = arith.constant 0 : i32
    %c0_i32_0 = arith.constant 0 : i32
    %c0_i32_1 = arith.constant 0 : i32
    return %c0_i32, %c0_i32_0 : i32, i32
  }
  func.func @transform_6(%arg0: i32, %arg1: i32, %arg2: memref<1xi32, #tpu.memory_space<smem>>) -> (i32, i32) {
    %c0_i32 = arith.constant 0 : i32
    %c0_i32_0 = arith.constant 0 : i32
    %c0_i32_1 = arith.constant 0 : i32
    return %c0_i32, %c0_i32_0 : i32, i32
  }
  func.func @transform_7(%arg0: i32, %arg1: i32, %arg2: memref<1xi32, #tpu.memory_space<smem>>) -> (i32, i32) {
    %c0_i32 = arith.constant 0 : i32
    %c0_i32_0 = arith.constant 0 : i32
    %c0_i32_1 = arith.constant 0 : i32
    return %c0_i32, %c0_i32_0 : i32, i32
  }
  func.func @transform_8(%arg0: i32, %arg1: i32, %arg2: memref<1xi32, #tpu.memory_space<smem>>) -> (i32, i32) {
    %c0_i32 = arith.constant 0 : i32
    %c0_i32_0 = arith.constant 0 : i32
    return %c0_i32, %arg0 : i32, i32
  }
}

</mosaic_0001>

<bundles_post_ra>
// kernel: tpu_custom_call.1
= control target key start
LH: loop header
LB: loop body
LE: loop exit
PB: predicated region body
PF: predicated region fallthrough
CT: control target
= control target key end

     0   :  { %15 = vsyncpa [#allocation9], 0  ;;  %s1064_s0 = inlined_call_operand.<no memory space> [shape: s32[1], index: 0, kind: input, shape index: {}]   ;;  %s1065_s1 = inlined_call_operand.hbm [shape: f32[8,8,128], index: 1, kind: input, shape index: {}]   ;;  %s1066_s2 = inlined_call_operand.vmem [shape: s32[8,128], index: 2, kind: input, shape index: {}]   ;;  %s1067_s3 = inlined_call_operand.vmem [shape: f32[8,128], index: 3, kind: input, shape index: {}]   ;;  %s1068_s4 = inlined_call_operand.vmem [shape: f32[8,1], index: 4, kind: input, shape index: {}]   ;;  %s1069_s5 = inlined_call_operand.vmem [shape: f32[8,1], index: 5, kind: input, shape index: {}]   ;;  %s1070_s6 = inlined_call_operand.vmem [shape: f32[8,1], index: 6, kind: input, shape index: {}]   ;;  %s1071_s7 = inlined_call_operand.vmem [shape: f32[8,8], index: 7, kind: input, shape index: {}]   ;;  %s1072_s8 = inlined_call_operand.vmem [shape: f32[8,8], index: 8, kind: input, shape index: {}]   ;;  %s1073_s9 = inlined_call_operand.hbm [shape: f32[1,128], index: 9, kind: output, shape index: {}]  }
   0x1   :  { %16 = vsyncpa [#allocation10], 0  ;;  %s776_s30 = smov [#allocation8]  }
   0x2   :  { %s22_s10 = sshll.u32 %s776_s30, 4  ;;  %s23_s10 = int_to_ptr.vmem [resolvable:$true] %s22_s10 }
   0x3   :  { %s672_s11 = scalar_lea.vmem %s23_s10, 1024  ;;  %p677_p1 = scmp.lt.s32.totalorder %s23_s10, %s23_s10 }
   0x4   :  { %p673_p0 = scmp.ne.s32.totalorder %s23_s10, %s672_s11  ;;  %p678_p2 = scmp.lt.s32.totalorder %s672_s11, %s672_s11 }
   0x6   :  { %p679_p3 = por %p678_p2, %p677_p1 }
   0x8   :  { %p680_p4 = pnand %p679_p3, %p673_p0 }
   0xa   :  { %683 = shalt.err (!%p680_p4)
}
   0xb   :  { %s777_s12 = smov 128   ;;  %s778_s13 = smov 8  }
   0xc   :  { %28 = dma.hbm_to_vmem [thread:$0]  %s1065_s1, 1024, %s23_s10, [#allocation9], %s777_s12, %s777_s12, %s778_s13  }
   0xd   :  { %740 = dma.done.wait [#allocation9], 1024  }
   0xe   :  { %741 = vsyncadd [#allocation9], 4294966272  ;;  %v50_v0 = vlaneseq  ;;  %v779_v1 = vmov 0   ;;  %v848_v5 = vld [vmem:[%s1069_s5] sm:$0xff]  ;;  %v780_v18 = vmov 0.0   ;;  %p199_p5 = scmp.gt.s32.totalorder %s1064_s0, 0 }
   0xf   :  { %653 = vset.pattern.permute.xlu0 %v779_v1  ;;  %v853_v6 = vld [vmem:[%s1070_s6] sm:$0xff]  ;;  %p561_p6 = scmp.lt.s32.totalorder %s1064_s0, 8 }
  0x10   :  { %v839_v2 = vshrl.u32 %v50_v0, 7  ;;  %v46_v7 = vld [vmem:[%s1068_s4] sm:$0xff] }
  0x11   :  { %180 = vperm.xlu0 %653, %v46_v7   ;;  %v49_v9 = vld [vmem:[%s1072_s8] sm:$0xff] }
  0x12   :  { %v59_v3 = vsub.s32 1, %v839_v2  ;;  %v843_v4 = vsub.s32 0, %v839_v2  ;;  %v66_v8 = vsub.s32 2, %v839_v2  ;;  %v73_v10 = vsub.s32 3, %v839_v2  ;;  %v559_v13 = vld [vmem:[%s1066_s2] ss:$0 sm:$0xff] }
  0x13   :  { %v80_v15 = vsub.s32 4, %v839_v2  ;;  %v87_v17 = vsub.s32 5, %v839_v2  ;;  %vm175_vm0 = vcmp.eq.s32.totalorder %v839_v2, %v559_v13  ;;  %v94_v21 = vsub.s32 6, %v839_v2  ;;  %v106_v26 = vld [vmem:[%s1071_s7] sm:$0xff]  ;;  %s200_s7 = scalar_select %p199_p5, %s1064_s0, 0 }
  0x14   :  { %v60_v11 = vrot.slane %v49_v9, %v59_v3  ;;  %v53_v12 = vrot.slane %v49_v9, %v843_v4  ;;  %v67_v14 = vrot.slane %v49_v9, %v66_v8  ;;  %v74_v16 = vrot.slane %v49_v9, %v73_v10  ;;  %v169_v36 = vld [vmem:[#allocation8] sm:$0xff] }
  0x15   :  { %v870_v19 = vsel %vm175_vm0, 1.0, %v780_v18   ;;  %v81_v20 = vrot.slane %v49_v9, %v80_v15  ;;  %v88_v22 = vrot.slane %v49_v9, %v87_v17  ;;  %v101_v23 = vsub.s32 7, %v839_v2  ;;  %s1088_s7 = smov (!%p561_p6, %s200_s7), 8 }
  0x16   :  { %62 = vbcast.lane.b32.xlu1 %v60_v11, 256  ;;  %55 = vbcast.lane.b32.xlu0 %v53_v12, 256  ;;  %v95_v24 = vrot.slane %v49_v9, %v94_v21  ;;  %v110_v27 = vrot.slane %v106_v26, %v843_v4  ;;  %v117_v28 = vrot.slane %v106_v26, %v59_v3  ;;  %p566_p7 = scmp.le.s32.totalorder %s1088_s7, 1 }
  0x17   :  { %v102_v25 = vrot.slane %v49_v9, %v101_v23  ;;  %v124_v29 = vrot.slane %v106_v26, %v66_v8  ;;  %v131_v30 = vrot.slane %v106_v26, %v73_v10  ;;  %v138_v31 = vrot.slane %v106_v26, %v80_v15  ;;  %s940_s0 = smov (!%p566_p7), 1  }
  0x18   :  { %v145_v32 = vrot.slane %v106_v26, %v87_v17  ;;  %v152_v33 = vrot.slane %v106_v26, %v94_v21  ;;  %v159_v34 = vrot.slane %v106_v26, %v101_v23  ;;  %v1074_v62 = vmov %v870_v19 }
  0x1a   :  { %69 = vbcast.lane.b32.xlu1 %v67_v14, 256  ;;  %76 = vbcast.lane.b32.xlu0 %v74_v16, 256 }
  0x1e   :  { %83 = vbcast.lane.b32.xlu1 %v81_v20, 256  ;;  %90 = vbcast.lane.b32.xlu0 %v88_v22, 256 }
  0x22   :  { %97 = vbcast.lane.b32.xlu1 %v95_v24, 256  ;;  %104 = vbcast.lane.b32.xlu0 %v102_v25, 256 }
  0x26   :  { %112 = vbcast.lane.b32.xlu1 %v110_v27, 256  ;;  %119 = vbcast.lane.b32.xlu0 %v117_v28, 256 }
  0x2a   :  { %126 = vbcast.lane.b32.xlu1 %v124_v29, 256  ;;  %133 = vbcast.lane.b32.xlu0 %v131_v30, 256 }
  0x2e   :  { %140 = vbcast.lane.b32.xlu1 %v138_v31, 256  ;;  %147 = vbcast.lane.b32.xlu0 %v145_v32, 256 }
  0x32   :  { %154 = vbcast.lane.b32.xlu1 %v152_v33, 256  ;;  %161 = vbcast.lane.b32.xlu0 %v159_v34, 256 }
  0x88   :  { %v889_v35 = vpop.permute.xlu1 %62 }
  0x8c   :  { %v891_v37 = vpop.permute.xlu1 %69  ;;  %v181_v38 = vpop.permute.xlu0 %180 }
  0x8d   :  { %v183_v39 = vadd.f32 %v181_v38, %v169_v36  }
  0x8f   :  { %v185_v41 = vmul.f32 %v870_v19, %v183_v39  ;;  %v1076_v0 = vmov %v183_v39 }
  0x90   :  { %v893_v40 = vpop.permute.xlu1 %83  ;;  %v896_v42 = vpop.permute.xlu0 %55 }
  0x91   :  { %v186_v43 = vrot.slane %v185_v41, 4 }
  0x93   :  { %v187_v45 = vadd.f32 %v186_v43, %v185_v41 }
  0x94   :  { %v898_v44 = vpop.permute.xlu1 %97  ;;  %v900_v46 = vpop.permute.xlu0 %76 }
  0x95   :  { %v188_v47 = vrot.slane %v187_v45, 2 }
  0x97   :  { %v189_v49 = vadd.f32 %v188_v47, %v187_v45 }
  0x98   :  { %v902_v48 = vpop.permute.xlu1 %112  ;;  %v904_v50 = vpop.permute.xlu0 %90 }
  0x99   :  { %v190_v51 = vrot.slane %v189_v49, 1 }
  0x9b   :  { %v191_v53 = vadd.f32 %v190_v51, %v189_v49 }
  0x9c   :  { %v906_v52 = vpop.permute.xlu1 %126  ;;  %v908_v54 = vpop.permute.xlu0 %104 }
  0x9d   :  { %192 = vst [vmem:[#allocation3] sm:$0x1] %v191_v53 }
  0xa0   :  { %v910_v55 = vpop.permute.xlu1 %140  ;;  %v912_v56 = vpop.permute.xlu0 %119 }
  0xa4   :  { %v914_v57 = vpop.permute.xlu1 %154  ;;  %v204_v58 = vld [vmem:[#allocation3] sm:$0x1]   ;;  %v916_v59 = vpop.permute.xlu0 %133 }
  0xa5   :  { %v1075_v63 = vmov %v204_v58 }
  0xa8   :  { %v918_v60 = vpop.permute.xlu0 %147  ;;  %548 = sbr.rel (%p566_p7) target bundleno = 308 (0x134), region = 68 }
  0xac   :  { %v920_v61 = vpop.permute.xlu0 %161 }
  0xad   :  { %v1077_v3 = vmov %v870_v19 }
  0xae LB: > { %v781_v7 = vmov 0   ;;  %s220_s10 = scalar_lea.vmem %s1066_s2, %s762_s0  ;;  %s222_s13 = scalar_lea.vmem %s1067_s3, %s762_s0  ;;  %v782_v9 = vmov 1966171168   ;;  %v232_v12 = vcombine.high %v750_v19, %v750_v19  ;;  %v783_v17 = vmov 0.0   ;;  %s762_s0 = sphi %s940_s0, %s210_s0   ;;  %v758_v39 = vphi %v183_v39, %v1084_v39   ;;  %v754_v58 = vphi %v204_v58, %v1083_v58   ;;  %v750_v19 = vphi %v870_v19, %v1082_v19   ;;  %v746_v3 = vphi %v1077_v3, %v1081_v3  }
  0xaf   : > { %654 = vset.pattern.permute.xlu0 %v781_v7  ;;  %v568_v8 = vld [vmem:[%s220_s10] ss:$0 sm:$0xff]  ;;  %v234_v10 = vunpack.c.l.s4 %v782_v9  ;;  %v354_v27 = vrot.slane %v758_v39, 4  ;;  %s567_s14 = sshll.u32 %s762_s0, 3  ;;  %s210_s0 = sadd.s32 1, %s762_s0  }
  0xb0   : > { %470 = vperm.xlu0 %654, %v853_v6   ;;  %v962_v11 = vld [vmem:[%s222_s13] sm:$0x1]  ;;  %vm228_vm2 = vcmp.eq.s32.totalorder %v839_v2, %v568_v8  ;;  %s218_s15 = scalar_lea.vmem [#allocation8], %s567_s14  ;;  %p209_p8 = scmp.ge.s32.totalorder %s210_s0, %s1088_s7 }
  0xb1   : > { %v235_v13 = vunpack.c.0.s8 %v234_v10  ;;  %vm346_vm1 = vcmp.gt.f32.partialorder %v962_v11, 0.5  ;;  %v970_v18 = vsel %vm228_vm2, 1.0, %v783_v17   ;;  %v355_v41 = vmax.f32 %v758_v39, %v354_v27 }
  0xb2   : > { %v347_v14 = vsel %vm346_vm1, 1, %v781_v7 }
  0xb3   : > { %v967_v15 = vsub.s32 %v235_v13, %v839_v2  ;;  %v351_v16 = vrot.slane %v347_v14, %v843_v4  ;;  %v356_v0 = vrot.slane %v355_v41, 2 }
  0xb5   : > { %v239_v20 = vrot.slane %v750_v19, %v967_v15  ;;  %v246_v21 = vrot.slane %v232_v12, %v967_v15  ;;  %vm974_vm3 = vcmp.eq.s32.totalorder %v351_v16, 1  ;;  %v357_v13 = vmax.f32 %v355_v41, %v356_v0 }
  0xb6   : > { %v981_v3 = vsel %vm974_vm3, %v970_v18, %v746_v3  }
  0xb7   : > { %v1080_v23 = vmov %v981_v3  ;;  %v247_v24 = vcombine.high %v239_v20, %v239_v20  ;;  %v248_v25 = vcombine.high %v246_v21, %v246_v21  ;;  %v255_v26 = vrot.slane %v239_v20, %v967_v15 }
  0xb8   : > { %v262_v28 = vrot.slane %v246_v21, %v967_v15  ;;  %v358_v21 = vrot.slane %v357_v13, 1 }
  0xb9   : > { %v269_v19 = vrot.slane %v247_v24, %v967_v15  ;;  %v277_v29 = vcombine.high %v255_v26, %v255_v26  ;;  %v284_v30 = vrot.slane %v255_v26, %v843_v4  ;;  %v276_v31 = vrot.slane %v248_v25, %v967_v15  ;;  %v219_v25 = vld [vmem:[%s218_s15] sm:$0xff] }
  0xba   : > { %v278_v36 = vcombine.high %v262_v28, %v262_v28  ;;  %v300_v45 = vrot.slane %v262_v28, %v843_v4  ;;  %v359_v27 = vmax.f32 %v357_v13, %v358_v21 }
  0xbb   : > { %v279_v32 = vcombine.high %v269_v19, %v269_v19  ;;  %v288_v33 = vrot.slane %v269_v19, %v843_v4  ;;  %v292_v34 = vrot.slane %v277_v29, %v843_v4  ;;  %v321_v38 = vmul.f32 %v284_v30, %v896_v42 }
  0xbc   : > { %v280_v51 = vcombine.high %v276_v31, %v276_v31  ;;  %v304_v53 = vrot.slane %v276_v31, %v843_v4  ;;  %v308_v3 = vrot.slane %v278_v36, %v843_v4  ;;  %v325_v7 = vmul.f32 %v300_v45, %v893_v40 }
  0xbd   : > { %v296_v43 = vrot.slane %v279_v32, %v843_v4  ;;  %v322_v47 = vmul.f32 %v288_v33, %v889_v35  ;;  %v323_v49 = vmul.f32 %v292_v34, %v891_v37  ;;  %v360_v29 = vsub.f32 %v758_v39, %v359_v27 }
  0xbe   : > { %v312_v9 = vrot.slane %v280_v51, %v843_v4  ;;  %v326_v10 = vmul.f32 %v304_v53, %v904_v50  ;;  %v327_v14 = vmul.f32 %v308_v3, %v898_v44 }
  0xbf   : > { %v324_v62 = vmul.f32 %v296_v43, %v900_v46  ;;  %v329_v63 = vadd.f32 %v322_v47, %v321_v38  ;;  %v361_v32 = vmul.f32 1.442695, %v360_v29 }
  0xc0   : > { %v328_v17 = vmul.f32 %v312_v9, %v908_v54 }
  0xc1   : > { %v330_v8 = vadd.f32 %v329_v63, %v323_v49  ;;  %655 = vpow2.f32 %v361_v32 }
  0xc3   : > { %v331_v12 = vadd.f32 %v330_v8, %v324_v62 }
  0xc5   : > { %v332_v16 = vadd.f32 %v331_v12, %v325_v7 }
  0xc7   : > { %v333_v20 = vadd.f32 %v332_v16, %v326_v10 }
  0xc9   : > { %v334_v24 = vadd.f32 %v333_v20, %v327_v14 }
  0xcb   : > { %v335_v26 = vadd.f32 %v334_v24, %v328_v17 }
  0xcd   : > { %v336_v28 = vadd.f32 %v335_v26, %v219_v25 }
  0xce   : > { %v656_v45 = vpop.eup %655 }
  0xcf   : > { %v337_v19 = vmul.f32 %v970_v18, %v336_v28  ;;  %v371_v47 = vrot.slane %v656_v45, %v967_v15  ;;  %v364_v62 = vcombine.high %v656_v45, %v656_v45 }
  0xd1   : > { %v338_v30 = vrot.slane %v337_v19, 4  ;;  %v379_v49 = vcombine.high %v371_v47, %v371_v47  ;;  %v387_v51 = vrot.slane %v371_v47, %v967_v15  ;;  %v378_v7 = vrot.slane %v364_v62, %v967_v15 }
  0xd3   : > { %v339_v31 = vadd.f32 %v338_v30, %v337_v19  ;;  %v401_v53 = vrot.slane %v379_v49, %v967_v15  ;;  %v409_v63 = vcombine.high %v387_v51, %v387_v51  ;;  %v416_v0 = vrot.slane %v387_v51, %v843_v4 }
  0xd4   : > { %v380_v10 = vcombine.high %v378_v7, %v378_v7  ;;  %v394_v12 = vrot.slane %v378_v7, %v967_v15 }
  0xd5   : > { %v340_v33 = vrot.slane %v339_v31, 2  ;;  %v420_v3 = vrot.slane %v401_v53, %v843_v4  ;;  %v411_v8 = vcombine.high %v401_v53, %v401_v53 }
  0xd6   : > { %v408_v17 = vrot.slane %v380_v10, %v967_v15  ;;  %v432_v20 = vrot.slane %v394_v12, %v843_v4  ;;  %v410_v26 = vcombine.high %v394_v12, %v394_v12 }
  0xd7   : > { %v341_v34 = vadd.f32 %v340_v33, %v339_v31  ;;  %v454_v9 = vmul.f32 %v420_v3, %v912_v56  ;;  %v428_v13 = vrot.slane %v411_v8, %v843_v4  ;;  %v1081_v3 = vmov %v1080_v23 }
  0xd8   : > { %v436_v28 = vrot.slane %v408_v17, %v843_v4  ;;  %v457_v19 = vmul.f32 %v432_v20, %v910_v55  ;;  %v412_v30 = vcombine.high %v408_v17, %v408_v17  ;;  %v440_v31 = vrot.slane %v410_v26, %v843_v4 }
  0xd9   : > { %v342_v36 = vrot.slane %v341_v34, 1  ;;  %v456_v21 = vmul.f32 %v428_v13, %v916_v59 }
  0xda   : > { %v458_v32 = vmul.f32 %v436_v28, %v918_v60  ;;  %v459_v15 = vmul.f32 %v440_v31, %v914_v57 }
  0xdb   : > { %v343_v38 = vadd.f32 %v342_v36, %v341_v34  ;;  %v444_v34 = vrot.slane %v412_v30, %v843_v4 }
  0xdd   : > { %v344_v41 = vmul.f32 %v343_v38, %v962_v11  ;;  %v424_v11 = vrot.slane %v409_v63, %v843_v4  ;;  %v460_v38 = vmul.f32 %v444_v34, %v920_v61 }
  0xdf   : > { %v345_v43 = vadd.f32 %v754_v58, %v344_v41   ;;  %v453_v58 = vmul.f32 %v416_v0, %v902_v48  ;;  %v455_v14 = vmul.f32 %v424_v11, %v906_v52 }
  0xe1   : > { %v461_v16 = vadd.f32 %v454_v9, %v453_v58  ;;  %v1083_v58 = vmov %v345_v43 }
  0xe3   : > { %v462_v24 = vadd.f32 %v461_v16, %v455_v14 }
  0xe5   : > { %v463_v29 = vadd.f32 %v462_v24, %v456_v21 }
  0xe7   : > { %v464_v33 = vadd.f32 %v463_v29, %v457_v19  ;;  %v1082_v19 = vmov %v970_v18 }
  0xe9   : > { %v465_v36 = vadd.f32 %v464_v33, %v458_v32 }
  0xeb   : > { %v466_v41 = vadd.f32 %v465_v36, %v459_v15 }
  0xed   : > { %v467_v45 = vadd.f32 %v466_v41, %v460_v38 }
  0xef   : > { %657 = vlog2.f32 %v467_v45 }
  0xfc   : > { %v658_v47 = vpop.eup %657 }
  0xfd   : > { %v475_v49 = vmul.f32 0.6931472, %v658_v47 }
 0x12b   : > { %v471_v51 = vpop.permute.xlu0 %470 }
 0x12c   : > { %v473_v53 = vadd.f32 %v471_v51, %v359_v27 }
 0x12e   : > { %v476_v62 = vadd.f32 %v475_v49, %v473_v53 }
 0x12f   :  { %212 = sbr.rel (!%p209_p8) target bundleno = 174 (0xae), region = 74 }
 0x130   : > { %v477_v63 = vadd.f32 %v476_v62, %v219_v25  ;;  %v1085_v62 = vmov (%p209_p8), %v1080_v23 }
 0x132   : > { %v478_v0 = vsel %vm974_vm3, %v477_v63, %v758_v39   ;;  %v1086_v63 = vmov (%p209_p8), %v345_v43 }
 0x133   : > { %v1084_v39 = vmov %v478_v0 }
 0x134 PF:  { %659 = vset.pattern.permute.xlu0 %v779_v1  ;;  %480 = vst [vmem:[#allocation3] sm:$0x1] %v770_v63  ;;  %s784_s2 = smov [#allocation11]   ;;  %v774_v0 = vphi %v1076_v0, %v478_v0   ;;  %v770_v63 = vphi %v1075_v63, %v1086_v63   ;;  %v766_v62 = vphi %v1074_v62, %v1085_v62  }
 0x135   :  { %490 = vperm.xlu0 %659, %v848_v5   ;;  %s529_s3 = sshll.u32 %s784_s2, 4  ;;  %s530_s3 = int_to_ptr.vmem [resolvable:$true] %s529_s3 }
 0x136   :  { %s684_s16 = scalar_lea.vmem %s530_s3, 16  ;;  %s688_s17 = scalar_lea.vmem %s530_s3, 32 }
 0x137   :  { %p685_p9 = scmp.ne.s32.totalorder %s530_s3, %s684_s16  ;;  %p689_p10 = scmp.lt.s32.totalorder %s530_s3, %s530_s3 }
 0x138   :  { %p690_p11 = scmp.lt.s32.totalorder %s688_s17, %s684_s16 }
 0x13a   :  { %p691_p12 = por %p690_p11, %p689_p10 }
 0x13b   :  { %v519_v25 = vld [vmem:[#allocation3] sm:$0x1] }
 0x13c   :  { %p692_p13 = pnand %p691_p12, %p685_p9 }
 0x1b0   :  { %v491_v2 = vpop.permute.xlu0 %490 }
 0x1b1   :  { %v500_v4 = vadd.f32 %v774_v0, %v491_v2  ;;  %v493_v50 = vmul.f32 %v766_v62, %v491_v2 }
 0x1b3   :  { %v501_v6 = vrot.slane %v500_v4, 4  ;;  %v494_v55 = vrot.slane %v493_v50, 4 }
 0x1b5   :  { %v502_v35 = vmax.f32 %v500_v4, %v501_v6  ;;  %v495_v57 = vadd.f32 %v494_v55, %v493_v50 }
 0x1b7   :  { %v503_v37 = vrot.slane %v502_v35, 2  ;;  %v496_v60 = vrot.slane %v495_v57, 2 }
 0x1b9   :  { %v504_v39 = vmax.f32 %v502_v35, %v503_v37  ;;  %v497_v61 = vadd.f32 %v496_v60, %v495_v57 }
 0x1bb   :  { %v505_v40 = vrot.slane %v504_v39, 1  ;;  %v498_v18 = vrot.slane %v497_v61, 1 }
 0x1bd   :  { %v506_v42 = vmax.f32 %v504_v39, %v505_v40  ;;  %v499_v22 = vadd.f32 %v498_v18, %v497_v61 }
 0x1bf   :  { %v507_v44 = vsub.f32 %v500_v4, %v506_v42  ;;  %v520_v3 = vadd.f32 %v519_v25, %v499_v22 }
 0x1c1   :  { %v508_v46 = vmul.f32 1.442695, %v507_v44 }
 0x1c3   :  { %660 = vpow2.f32 %v508_v46 }
 0x1d0   :  { %v661_v48 = vpop.eup %660 }
 0x1d1   :  { %v510_v52 = vrot.slane %v661_v48, 4 }
 0x1d3   :  { %v511_v54 = vadd.f32 %v661_v48, %v510_v52 }
 0x1d5   :  { %v512_v1 = vrot.slane %v511_v54, 2 }
 0x1d7   :  { %v513_v56 = vadd.f32 %v512_v1, %v511_v54 }
 0x1d9   :  { %v514_v5 = vrot.slane %v513_v56, 1 }
 0x1db   :  { %v515_v59 = vadd.f32 %v514_v5, %v513_v56 }
 0x1dd   :  { %662 = vlog2.f32 %v515_v59 }
 0x1ea   :  { %v663_v23 = vpop.eup %662 }
 0x1eb   :  { %v517_v27 = vmul.f32 0.6931472, %v663_v23 }
 0x1ed   :  { %v518_v43 = vadd.f32 %v517_v27, %v506_v42 }
 0x1ef   :  { %v521_v7 = vsub.f32 %v520_v3, %v518_v43 }
 0x1f1   :  { %522 = vst [vmem:[#allocation11] sm:$0x1] %v521_v7 }
 0x1f2   :  { %695 = shalt.err (!%p692_p13)
}
 0x1f3   :  { %532 = dma.vmem_to_hbm [thread:$0]  %s530_s3, 16, %s1073_s9, [#allocation10]  }
 0x1f4   :  { %742 = dma.done.wait [#allocation10], 16  }
 0x1f5   :  { %743 = vsyncadd [#allocation10], 4294967280 }
 0x1f6   :  { %536 = vsyncpa [#allocation9], 1 }
 0x1f7   :  { %537 = vsyncpa [#allocation10], 1 }

</bundles_post_ra>
